<compile_context>
chip_gen: v6e
topology: v6e:2x2x1
jax: 0.10.0
libtpu: 0.0.40
codegen_flags: <defaults>
</compile_context>

<pallas_src>
import functools

import jax
import jax.numpy as jnp
from jax.experimental import pallas as pl
from jax.experimental.pallas import tpu as pltpu

EPS = 1e-5            # nn.BatchNorm1d default eps
LANE = 128            # TPU lane width (last-dim tiling)
SUBLANE = 16          # bf16 sublane packing granularity
TILE_N_CAP = 8192     # upper bound on node-tile rows
N_STAT_GROUPS = 2     # per-group partial BN stats -> both v7x TensorCores busy


def _round_up(x, m):
    return (x + m - 1) // m * m


def _cdiv(a, b):
    return -(-a // b)


def _pad2d(x, rows, cols, dtype):
    r, c = x.shape
    return jnp.pad(x, ((0, rows - r), (0, cols - c))).astype(dtype)


def _vmem_budget_bytes():
    """Per-generation VMEM budget: ~75% of reported capacity (128 MiB on
    v5e/v6e, 64 MiB per TensorCore on v7x); conservative fallback if the query
    is unavailable."""
    cap = 64 * 1024 * 1024                       # v7x per-TC (most restrictive)
    try:
        cap = int(getattr(pltpu.get_tpu_info(), "vmem_capacity_bytes", cap)) or cap
    except Exception:
        pass
    return int(cap * 0.75)


# ---------------------------------------------------------------------------
# Fused single-call path (small problems: everything resident in VMEM).
# ---------------------------------------------------------------------------
def _fused_kernel(h_ref, w1_ref, g1_ref, b1_ref, w2_ref, g2_ref, b2_ref, o_ref,
                  *, n_valid, mask_pad_rows):
    inv_n = 1.0 / n_valid
    # Biases dropped: batch-stats BatchNorm cancels per-feature constants.
    z1 = jnp.dot(h_ref[...], w1_ref[...], preferred_element_type=jnp.float32)
    # Pad node rows of z1 are exactly zero (zero inputs, no bias) -> BN1 stats
    # over all rows divided by the true count are correct.
    mu1 = jnp.sum(z1, axis=0, keepdims=True) * inv_n
    var1 = jnp.maximum(jnp.sum(z1 * z1, axis=0, keepdims=True) * inv_n - mu1 * mu1, 0.0)
    scale1 = g1_ref[...] * jax.lax.rsqrt(var1 + EPS)
    shift1 = b1_ref[...] - mu1 * scale1
    h1 = jnp.maximum(z1 * scale1 + shift1, 0.0)
    if mask_pad_rows:
        row = jax.lax.broadcasted_iota(jnp.int32, h1.shape, 0)
        h1 = jnp.where(row < n_valid, h1, 0.0)   # keep pad rows out of BN2 stats
    z2 = jnp.dot(h1.astype(w2_ref.dtype), w2_ref[...],
                 preferred_element_type=jnp.float32)
    mu2 = jnp.sum(z2, axis=0, keepdims=True) * inv_n
    var2 = jnp.maximum(jnp.sum(z2 * z2, axis=0, keepdims=True) * inv_n - mu2 * mu2, 0.0)
    scale2 = g2_ref[...] * jax.lax.rsqrt(var2 + EPS)
    shift2 = b2_ref[...] - mu2 * scale2
    o_ref[...] = jnp.maximum(z2 * scale2 + shift2, 0.0).astype(o_ref.dtype)


# ---------------------------------------------------------------------------
# Streaming pass 1: z1 = h @ W1 (bf16 MXU); per-group BN1 sum / sum-of-squares.
# ---------------------------------------------------------------------------
def _linear_stats_kernel(x_ref, w_ref, z_ref, sum_ref, ssq_ref):
    # (1, D) partial sums are broadcast into all 8 sublanes of the (1, 8, D)
    # accumulator block (lane/sublane aligned); the host reads sublane 0 only.
    @pl.when(pl.program_id(1) == 0)
    def _():
        sum_ref[...] = jnp.zeros_like(sum_ref)
        ssq_ref[...] = jnp.zeros_like(ssq_ref)

    # Bias dropped: batch-stats BatchNorm cancels per-feature constants.
    z = jnp.dot(x_ref[...], w_ref[...], preferred_element_type=jnp.float32)
    z_ref[...] = z.astype(z_ref.dtype)
    # Pad node rows are exactly zero (zero inputs, no bias) -> stats unaffected.
    sum_ref[...] += jnp.sum(z, axis=0, keepdims=True)[None]
    ssq_ref[...] += jnp.sum(z * z, axis=0, keepdims=True)[None]


# ---------------------------------------------------------------------------
# Streaming pass 2: h1 = ReLU(BN1(z1)) folded; z2 = h1 @ W2; BN2 partial stats.
# ---------------------------------------------------------------------------
def _bn_relu_linear_stats_kernel(z1_ref, ss_ref, w_ref, z2_ref, sum_ref, ssq_ref):
    @pl.when(pl.program_id(1) == 0)
    def _():
        sum_ref[...] = jnp.zeros_like(sum_ref)
        ssq_ref[...] = jnp.zeros_like(ssq_ref)

    ss = ss_ref[...]                              # (2, D): row 0 scale, row 1 shift
    h1 = jnp.maximum(z1_ref[...].astype(jnp.float32) * ss[0:1, :] + ss[1:2, :], 0.0)
    # No pad-row mask here (saves VALU work on every tile); the pad-row
    # contribution is subtracted analytically on the host side.
    z2 = jnp.dot(h1.astype(jnp.bfloat16), w_ref[...],
                 preferred_element_type=jnp.float32)
    z2_ref[...] = z2.astype(z2_ref.dtype)
    sum_ref[...] += jnp.sum(z2, axis=0, keepdims=True)[None]
    ssq_ref[...] += jnp.sum(z2 * z2, axis=0, keepdims=True)[None]


# ---------------------------------------------------------------------------
# Streaming pass 3: out = ReLU(BN2(z2)) folded (pure elementwise, bf16 stores).
# ---------------------------------------------------------------------------
def _bn_relu_kernel(z_ref, ss_ref, o_ref):
    ss = ss_ref[...]
    o_ref[...] = jnp.maximum(
        z_ref[...].astype(jnp.float32) * ss[0:1, :] + ss[1:2, :], 0.0
    ).astype(o_ref.dtype)


# ---------------------------------------------------------------------------
# Host-side helpers (tiny (1, D) math).
# ---------------------------------------------------------------------------
def _reduce_stats(sum_out, ssq_out):
    # Each stat group broadcast its partial into all 8 sublanes -> read row 0.
    return (jnp.sum(sum_out[:, 0, :], axis=0, keepdims=True),
            jnp.sum(ssq_out[:, 0, :], axis=0, keepdims=True))


def _bn_scale_shift(s, q, gamma, beta, n):
    # Finalize batch statistics once per layer.
    # TODO(synk): compensated / shifted sums if |mean| >> std on real features.
    mu = s / n
    var = jnp.maximum(q / n - mu * mu, 0.0)        # biased variance (training BN)
    scale = gamma * jax.lax.rsqrt(var + EPS)
    shift = beta - mu * scale
    return jnp.concatenate([scale, shift], axis=0)  # packed (2, D) -> one block


def _fused_fits(n_p, din_p, dh_p, do_p, budget, out_bytes):
    """Whole problem (activations + f32 temporaries + weights) resident in VMEM?"""
    act = n_p * (2 * din_p + 4 * dh_p + 2 * dh_p + 4 * do_p + out_bytes * do_p)
    wts = 2 * (din_p * dh_p + dh_p * do_p) + 4 * 4 * (dh_p + do_p)
    return n_p <= 4096 and (act + wts) * 2 < budget


def _plan_node_tiles(n, din_p, dh_p, do_p, budget, out_bytes):
    """Balanced node tiles sized from the VMEM budget (double-buffered streamed
    blocks + resident, double-buffered weights), split into N_STAT_GROUPS equal
    groups of tiles so v7x's two TensorCores share passes 1/2."""
    bpe = 2  # bf16 streamed activations
    row_bytes = max(2 * bpe * (din_p + dh_p),            # pass 1: h in, z1 out
                    2 * bpe * (dh_p + do_p),             # pass 2: z1 in, z2 out
                    2 * do_p * (bpe + out_bytes))        # pass 3: z2 in, out
    resident = max(2 * bpe * din_p * dh_p,               # W1 (double-buffered)
                   2 * bpe * dh_p * do_p + 2 * 4 * 2 * dh_p)  # W2 + scale/shift
    resident += 2 * 2 * 4 * 8 * max(dh_p, do_p)          # stat accumulator blocks
    # TODO(synk): stream the weight K dimension (extra 'arbitrary' grid axis +
    # f32 scratch accumulator) when `resident` alone approaches the budget.
    avail = budget - resident - (2 << 20)                # slack for compiler temps
    cap = max(SUBLANE,
              min(TILE_N_CAP, (max(avail, 0) // row_bytes) // SUBLANE * SUBLANE))
    tiles_per_group = max(1, _cdiv(_cdiv(n, cap), N_STAT_GROUPS))
    total_tiles = tiles_per_group * N_STAT_GROUPS
    tile_n = _round_up(_cdiv(n, total_tiles), SUBLANE)
    return tile_n, tiles_per_group, total_tiles


# ---------------------------------------------------------------------------
# Public entry point.
# ---------------------------------------------------------------------------
def apply_node_func(h, params, *, out_dtype=jnp.bfloat16, force_streaming=False):
    (w1, _b1, g1, be1, w2, _b2, g2, be2) = params   # linear biases unused (BN cancels)
    n, d_in = h.shape
    d_hidden = w1.shape[1]
    d_out = w2.shape[1]
    out_bytes = jnp.dtype(out_dtype).itemsize

    # Lane-dense feature padding (full 128-lane loads/stores, full MXU use).
    din_p = _round_up(d_in, LANE)
    dh_p = _round_up(d_hidden, LANE)
    do_p = _round_up(d_out, LANE)

    w1_p = _pad2d(w1, din_p, dh_p, jnp.bfloat16)
    w2_p = _pad2d(w2, dh_p, do_p, jnp.bfloat16)
    g1_p = _pad2d(g1, 1, dh_p, jnp.float32)     # gamma pad = 0 -> padded feats stay 0
    be1_p = _pad2d(be1, 1, dh_p, jnp.float32)
    g2_p = _pad2d(g2, 1, do_p, jnp.float32)
    be2_p = _pad2d(be2, 1, do_p, jnp.float32)

    budget = _vmem_budget_bytes()

    # ---- small-problem fast path: everything resident, one launch ----------
    n_small = _round_up(n, SUBLANE)
    if not force_streaming and _fused_fits(n_small, din_p, dh_p, do_p, budget, out_bytes):
        h_p = _pad2d(h, n_small, din_p, jnp.bfloat16)
        out_p = pl.pallas_call(
            functools.partial(_fused_kernel, n_valid=n,
                              mask_pad_rows=(n_small != n)),
            out_shape=jax.ShapeDtypeStruct((n_small, do_p), out_dtype),
            compiler_params=pltpu.CompilerParams(vmem_limit_bytes=budget),
        )(h_p, w1_p, g1_p, be1_p, w2_p, g2_p, be2_p)
        return out_p[:n, :d_out]

    # ---- streaming three-pass path ------------------------------------------
    tile_n, tiles_per_group, total_tiles = _plan_node_tiles(
        n, din_p, dh_p, do_p, budget, out_bytes)
    n_p = tile_n * total_tiles
    h_p = _pad2d(h, n_p, din_p, jnp.bfloat16)

    tiled12 = lambda c, i: (c * tiles_per_group + i, 0)   # streamed node tiles
    resident12 = lambda c, i: (0, 0)                      # weights / scale-shift
    stat12 = lambda c, i: (c, 0, 0)                       # per-group accumulators
    stat_spec = lambda d: pl.BlockSpec((1, 8, d), stat12)
    stat_shape = lambda d: jax.ShapeDtypeStruct((N_STAT_GROUPS, 8, d), jnp.float32)
    cp12 = pltpu.CompilerParams(dimension_semantics=("parallel", "arbitrary"),
                                vmem_limit_bytes=budget)
    cp3 = pltpu.CompilerParams(dimension_semantics=("parallel",),
                               vmem_limit_bytes=budget)

    # ---- Pass 1 -------------------------------------------------------------
    z1, s1r, q1r = pl.pallas_call(
        _linear_stats_kernel,
        grid=(N_STAT_GROUPS, tiles_per_group),
        in_specs=[pl.BlockSpec((tile_n, din_p), tiled12),
                  pl.BlockSpec((din_p, dh_p), resident12)],
        out_specs=(pl.BlockSpec((tile_n, dh_p), tiled12),
                   stat_spec(dh_p), stat_spec(dh_p)),
        out_shape=(jax.ShapeDtypeStruct((n_p, dh_p), jnp.bfloat16),
                   stat_shape(dh_p), stat_shape(dh_p)),
        compiler_params=cp12,
    )(h_p, w1_p)
    s1, q1 = _reduce_stats(s1r, q1r)
    ss1 = _bn_scale_shift(s1, q1, g1_p, be1_p, n)          # (2, dh_p)

    # ---- Pass 2 -------------------------------------------------------------
    z2, s2r, q2r = pl.pallas_call(
        _bn_relu_linear_stats_kernel,
        grid=(N_STAT_GROUPS, tiles_per_group),
        in_specs=[pl.BlockSpec((tile_n, dh_p), tiled12),
                  pl.BlockSpec((2, dh_p), resident12),
                  pl.BlockSpec((dh_p, do_p), resident12)],
        out_specs=(pl.BlockSpec((tile_n, do_p), tiled12),
                   stat_spec(do_p), stat_spec(do_p)),
        out_shape=(jax.ShapeDtypeStruct((n_p, do_p), jnp.bfloat16),
                   stat_shape(do_p), stat_shape(do_p)),
        compiler_params=cp12,
    )(z1, ss1, w2_p)
    s2, q2 = _reduce_stats(s2r, q2r)

    # Analytic pad-row correction (pad z1 rows are zero -> h1 = ReLU(shift1),
    # z2 = ReLU(shift1) @ W2), computed once on the host instead of masking
    # every tile inside the kernel.
    n_pad = n_p - n
    if n_pad:
        pad_h1 = jnp.maximum(ss1[1:2, :], 0.0).astype(jnp.bfloat16)
        pad_z2 = jnp.dot(pad_h1, w2_p, preferred_element_type=jnp.float32)
        s2 = s2 - n_pad * pad_z2
        q2 = q2 - n_pad * (pad_z2 * pad_z2)
    ss2 = _bn_scale_shift(s2, q2, g2_p, be2_p, n)

    # ---- Pass 3 -------------------------------------------------------------
    out_p = pl.pallas_call(
        _bn_relu_kernel,
        grid=(total_tiles,),
        in_specs=[pl.BlockSpec((tile_n, do_p), lambda i: (i, 0)),
                  pl.BlockSpec((2, do_p), lambda i: (0, 0))],
        out_specs=pl.BlockSpec((tile_n, do_p), lambda i: (i, 0)),
        out_shape=jax.ShapeDtypeStruct((n_p, do_p), out_dtype),
        compiler_params=cp3,
    )(z2, ss2)
    # TODO(synk): fuse this BN2+ReLU into the downstream consumer to drop the pass.
    return out_p[:n, :d_out]


# ---------------------------------------------------------------------------
# Pure-JAX f32 reference (keeps the linear biases to demonstrate that dropping
# them in-kernel is mathematically equivalent under batch-stats BatchNorm).
# ---------------------------------------------------------------------------
def reference(h, params):
    (w1, b1, g1, be1, w2, b2, g2, be2) = params

    def bn_relu(z, g, b):
        mu = jnp.mean(z, axis=0, keepdims=True)
        var = jnp.mean((z - mu) ** 2, axis=0, keepdims=True)
        return jnp.maximum((z - mu) / jnp.sqrt(var + EPS) * g + b, 0.0)

    h1 = bn_relu(h @ w1 + b1, g1, be1)
    z2 = h1 @ w2 + b2
    return bn_relu(z2, g2, be2)


def make_params(key, d_in, d_hidden, d_out):
    k1, k2, k3, k4 = jax.random.split(key, 4)
    w1 = jax.random.normal(k1, (d_in, d_hidden), jnp.float32) * (1.0 / jnp.sqrt(d_in))
    b1 = jax.random.normal(k2, (1, d_hidden), jnp.float32) * 0.01
    g1 = jnp.ones((1, d_hidden), jnp.float32)     # BN gamma init = 1
    be1 = jnp.zeros((1, d_hidden), jnp.float32)   # BN beta  init = 0
    w2 = jax.random.normal(k3, (d_hidden, d_out), jnp.float32) * (1.0 / jnp.sqrt(d_hidden))
    b2 = jax.random.normal(k4, (1, d_out), jnp.float32) * 0.01
    g2 = jnp.ones((1, d_out), jnp.float32)
    be2 = jnp.zeros((1, d_out), jnp.float32)
    return (w1, b1, g1, be1, w2, b2, g2, be2)


if __name__ == "__main__":
    key = jax.random.PRNGKey(0)
    k_h, k_p, k_h2, k_p2 = jax.random.split(key, 4)

    # Small node-feature problem -> exercises the fused single-call fast path.
    N, D_IN, D_HIDDEN, D_OUT = 8, 16, 32, 32
    h = jax.random.normal(k_h, (N, D_IN), jnp.float32)
    params = make_params(k_p, D_IN, D_HIDDEN, D_OUT)
    out = jax.block_until_ready(apply_node_func(h, params))
    ref = reference(h, params)
    assert out.shape == (N, D_OUT)
    diff = jnp.max(jnp.abs(out.astype(jnp.float32) - ref))
    assert jnp.allclose(out.astype(jnp.float32), ref, atol=5e-2, rtol=5e-2), \
        f"fused path max abs diff = {diff}"

    # Larger, ragged problem -> exercises the streaming three-pass path
    # (balanced node tiles, per-group partial BN stats, pad-row correction).
    N2, D_IN2, D_HIDDEN2, D_OUT2 = 1000, 48, 160, 96
    h2 = jax.random.normal(k_h2, (N2, D_IN2), jnp.float32)
    params2 = make_params(k_p2, D_IN2, D_HIDDEN2, D_OUT2)
    out2 = jax.block_until_ready(apply_node_func(h2, params2, force_streaming=True))
    ref2 = reference(h2, params2)
    assert out2.shape == (N2, D_OUT2)
    diff2 = jnp.max(jnp.abs(out2.astype(jnp.float32) - ref2))
    # bf16 MXU matmuls + bf16 intermediates/output -> bf16-level tolerance.
    assert jnp.allclose(out2.astype(jnp.float32), ref2, atol=1e-1, rtol=5e-2), \
        f"streaming path max abs diff = {diff2}"

    print("KERNEL_OK")
</pallas_src>

<mosaic_0001>
module attributes {stable_mosaic.version = 11 : i64} {
  func.func @_fused_kernel(%arg0: memref<16x128xbf16, #tpu.memory_space<vmem>>, %arg1: memref<128x128xbf16, #tpu.memory_space<vmem>>, %arg2: memref<1x128xf32, #tpu.memory_space<vmem>>, %arg3: memref<1x128xf32, #tpu.memory_space<vmem>>, %arg4: memref<128x128xbf16, #tpu.memory_space<vmem>>, %arg5: memref<1x128xf32, #tpu.memory_space<vmem>>, %arg6: memref<1x128xf32, #tpu.memory_space<vmem>>, %arg7: memref<16x128xbf16, #tpu.memory_space<vmem>>) attributes {dimension_semantics = [], scalar_prefetch = 0 : i64, scratch_operands = 0 : i64, tpu.core_type = #tpu.core_type<tc>} {
    %c0 = arith.constant 0 : index
    %c0_0 = arith.constant 0 : index
    %0 = vector.load %arg0[%c0, %c0_0] : memref<16x128xbf16, #tpu.memory_space<vmem>>, vector<16x128xbf16>
    %c0_1 = arith.constant 0 : index
    %c0_2 = arith.constant 0 : index
    %1 = vector.load %arg1[%c0_1, %c0_2] : memref<128x128xbf16, #tpu.memory_space<vmem>>, vector<128x128xbf16>
    %cst = arith.constant dense<0.000000e+00> : vector<16x128xf32>
    %2 = tpu.matmul %0, %1, %cst {dimension_numbers = #tpu.dot_dimension_numbers<[1], [0], [0], [1], [0, 0, 1, 1], [], []>} : vector<16x128xbf16>, vector<128x128xbf16>, vector<16x128xf32> -> vector<16x128xf32>
    %cst_3 = arith.constant dense<0.000000e+00> : vector<128xf32>
    %3 = vector.multi_reduction <add>, %2, %cst_3 [0] : vector<16x128xf32> to vector<128xf32>
    %4 = vector.shape_cast %3 : vector<128xf32> to vector<1x128xf32>
    %cst_4 = arith.constant 1.250000e-01 : f32
    %5 = vector.broadcast %cst_4 : f32 to vector<1x128xf32>
    %6 = arith.mulf %4, %5 : vector<1x128xf32>
    %7 = arith.mulf %2, %2 : vector<16x128xf32>
    %cst_5 = arith.constant dense<0.000000e+00> : vector<128xf32>
    %8 = vector.multi_reduction <add>, %7, %cst_5 [0] : vector<16x128xf32> to vector<128xf32>
    %9 = vector.shape_cast %8 : vector<128xf32> to vector<1x128xf32>
    %cst_6 = arith.constant 1.250000e-01 : f32
    %10 = vector.broadcast %cst_6 : f32 to vector<1x128xf32>
    %11 = arith.mulf %9, %10 : vector<1x128xf32>
    %12 = arith.mulf %6, %6 : vector<1x128xf32>
    %13 = arith.subf %11, %12 : vector<1x128xf32>
    %cst_7 = arith.constant 0.000000e+00 : f32
    %14 = vector.broadcast %cst_7 : f32 to vector<1x128xf32>
    %15 = arith.maximumf %13, %14 : vector<1x128xf32>
    %c0_8 = arith.constant 0 : index
    %c0_9 = arith.constant 0 : index
    %16 = vector.load %arg2[%c0_8, %c0_9] : memref<1x128xf32, #tpu.memory_space<vmem>>, vector<1x128xf32>
    %cst_10 = arith.constant 9.99999974E-6 : f32
    %17 = vector.broadcast %cst_10 : f32 to vector<1x128xf32>
    %18 = arith.addf %15, %17 : vector<1x128xf32>
    %19 = math.rsqrt %18 : vector<1x128xf32>
    %20 = arith.mulf %16, %19 : vector<1x128xf32>
    %c0_11 = arith.constant 0 : index
    %c0_12 = arith.constant 0 : index
    %21 = vector.load %arg3[%c0_11, %c0_12] : memref<1x128xf32, #tpu.memory_space<vmem>>, vector<1x128xf32>
    %22 = arith.mulf %6, %20 : vector<1x128xf32>
    %23 = arith.subf %21, %22 : vector<1x128xf32>
    %24 = vector.broadcast %20 : vector<1x128xf32> to vector<16x128xf32>
    %25 = arith.mulf %2, %24 : vector<16x128xf32>
    %26 = vector.broadcast %23 : vector<1x128xf32> to vector<16x128xf32>
    %27 = arith.addf %25, %26 : vector<16x128xf32>
    %cst_13 = arith.constant 0.000000e+00 : f32
    %28 = vector.broadcast %cst_13 : f32 to vector<16x128xf32>
    %29 = arith.maximumf %27, %28 : vector<16x128xf32>
    %30 = tpu.iota {dimensions = array<i32: 0>} : vector<16x128xi32>
    %c8_i32 = arith.constant 8 : i32
    %31 = vector.broadcast %c8_i32 : i32 to vector<16x128xi32>
    %32 = arith.cmpi slt, %30, %31 : vector<16x128xi32>
    %cst_14 = arith.constant 0.000000e+00 : f32
    %33 = vector.broadcast %cst_14 : f32 to vector<16x128xf32>
    %34 = arith.select %32, %29, %33 : vector<16x128xi1>, vector<16x128xf32>
    %35 = arith.truncf %34 : vector<16x128xf32> to vector<16x128xbf16>
    %c0_15 = arith.constant 0 : index
    %c0_16 = arith.constant 0 : index
    %36 = vector.load %arg4[%c0_15, %c0_16] : memref<128x128xbf16, #tpu.memory_space<vmem>>, vector<128x128xbf16>
    %cst_17 = arith.constant dense<0.000000e+00> : vector<16x128xf32>
    %37 = tpu.matmul %35, %36, %cst_17 {dimension_numbers = #tpu.dot_dimension_numbers<[1], [0], [0], [1], [0, 0, 1, 1], [], []>} : vector<16x128xbf16>, vector<128x128xbf16>, vector<16x128xf32> -> vector<16x128xf32>
    %cst_18 = arith.constant dense<0.000000e+00> : vector<128xf32>
    %38 = vector.multi_reduction <add>, %37, %cst_18 [0] : vector<16x128xf32> to vector<128xf32>
    %39 = vector.shape_cast %38 : vector<128xf32> to vector<1x128xf32>
    %cst_19 = arith.constant 1.250000e-01 : f32
    %40 = vector.broadcast %cst_19 : f32 to vector<1x128xf32>
    %41 = arith.mulf %39, %40 : vector<1x128xf32>
    %42 = arith.mulf %37, %37 : vector<16x128xf32>
    %cst_20 = arith.constant dense<0.000000e+00> : vector<128xf32>
    %43 = vector.multi_reduction <add>, %42, %cst_20 [0] : vector<16x128xf32> to vector<128xf32>
    %44 = vector.shape_cast %43 : vector<128xf32> to vector<1x128xf32>
    %cst_21 = arith.constant 1.250000e-01 : f32
    %45 = vector.broadcast %cst_21 : f32 to vector<1x128xf32>
    %46 = arith.mulf %44, %45 : vector<1x128xf32>
    %47 = arith.mulf %41, %41 : vector<1x128xf32>
    %48 = arith.subf %46, %47 : vector<1x128xf32>
    %cst_22 = arith.constant 0.000000e+00 : f32
    %49 = vector.broadcast %cst_22 : f32 to vector<1x128xf32>
    %50 = arith.maximumf %48, %49 : vector<1x128xf32>
    %c0_23 = arith.constant 0 : index
    %c0_24 = arith.constant 0 : index
    %51 = vector.load %arg5[%c0_23, %c0_24] : memref<1x128xf32, #tpu.memory_space<vmem>>, vector<1x128xf32>
    %cst_25 = arith.constant 9.99999974E-6 : f32
    %52 = vector.broadcast %cst_25 : f32 to vector<1x128xf32>
    %53 = arith.addf %50, %52 : vector<1x128xf32>
    %54 = math.rsqrt %53 : vector<1x128xf32>
    %55 = arith.mulf %51, %54 : vector<1x128xf32>
    %c0_26 = arith.constant 0 : index
    %c0_27 = arith.constant 0 : index
    %56 = vector.load %arg6[%c0_26, %c0_27] : memref<1x128xf32, #tpu.memory_space<vmem>>, vector<1x128xf32>
    %57 = arith.mulf %41, %55 : vector<1x128xf32>
    %58 = arith.subf %56, %57 : vector<1x128xf32>
    %59 = vector.broadcast %55 : vector<1x128xf32> to vector<16x128xf32>
    %60 = arith.mulf %37, %59 : vector<16x128xf32>
    %61 = vector.broadcast %58 : vector<1x128xf32> to vector<16x128xf32>
    %62 = arith.addf %60, %61 : vector<16x128xf32>
    %cst_28 = arith.constant 0.000000e+00 : f32
    %63 = vector.broadcast %cst_28 : f32 to vector<16x128xf32>
    %64 = arith.maximumf %62, %63 : vector<16x128xf32>
    %65 = arith.truncf %64 : vector<16x128xf32> to vector<16x128xbf16>
    %c0_29 = arith.constant 0 : index
    %c0_30 = arith.constant 0 : index
    %66 = vector.load %arg7[%c0_29, %c0_30] : memref<16x128xbf16, #tpu.memory_space<vmem>>, vector<16x128xbf16>
    tpu.vector_store %arg7[%c0_29, %c0_30], %65 {strides = array<i32>} : memref<16x128xbf16, #tpu.memory_space<vmem>>, vector<16x128xbf16>,
    return
  }
}

</mosaic_0001>

<bundles_post_ra>
// kernel: tpu_custom_call.1
= control target key start
LH: loop header
LB: loop body
LE: loop exit
PB: predicated region body
PF: predicated region fallthrough
CT: control target
= control target key end

     0   :  { %12 = vsyncpa [#allocation3], 0  ;;  %s717_s0 = inlined_call_operand.hbm [shape: bf16[16,128], index: 0, kind: input, shape index: {}]   ;;  %s718_s1 = inlined_call_operand.hbm [shape: bf16[128,128], index: 1, kind: input, shape index: {}]   ;;  %s719_s2 = inlined_call_operand.vmem [shape: f32[1,128], index: 2, kind: input, shape index: {}]   ;;  %s720_s3 = inlined_call_operand.vmem [shape: f32[1,128], index: 3, kind: input, shape index: {}]   ;;  %s721_s4 = inlined_call_operand.hbm [shape: bf16[128,128], index: 4, kind: input, shape index: {}]   ;;  %s722_s5 = inlined_call_operand.vmem [shape: f32[1,128], index: 5, kind: input, shape index: {}]   ;;  %s723_s6 = inlined_call_operand.vmem [shape: f32[1,128], index: 6, kind: input, shape index: {}]   ;;  %s724_s7 = inlined_call_operand.hbm [shape: bf16[16,128], index: 7, kind: output, shape index: {}]  }
   0x1   :  { %13 = vsyncpa [#allocation6], 0 }
   0x2   :  { %14 = vsyncpa [#allocation4], 0  ;;  %s614_s24 = smov [#allocation5]   ;;  %s615_s26 = smov [#allocation2]  }
   0x3   :  { %s32_s25 = sshll.u32 %s614_s24, 4  ;;  %s20_s27 = sshll.u32 %s615_s26, 4  ;;  %s33_s25 = int_to_ptr.vmem [resolvable:$true] %s32_s25  ;;  %s21_s27 = int_to_ptr.vmem [resolvable:$true] %s20_s27 }
   0x4   :  { %s536_s28 = scalar_lea.vmem %s33_s25, 1024  ;;  %p541_p1 = scmp.lt.s32.totalorder %s33_s25, %s33_s25 }
   0x5   :  { %p537_p0 = scmp.ne.s32.totalorder %s33_s25, %s536_s28  ;;  %p542_p2 = scmp.lt.s32.totalorder %s536_s28, %s536_s28 }
   0x7   :  { %p543_p3 = por %p542_p2, %p541_p1 }
   0x9   :  { %p544_p4 = pnand %p543_p3, %p537_p0 }
   0xb   :  { %547 = shalt.err (!%p544_p4)
}
   0xc   :  { %s616_s29 = smov 64   ;;  %s617_s30 = smov 4  }
   0xd   :  { %38 = dma.hbm_to_vmem [thread:$0]  %s718_s1, 1024, %s33_s25, [#allocation6], %s616_s29, %s616_s29, %s617_s30  }
   0xe   :  { %s556_s10 = scalar_lea.vmem %s21_s27, 128  ;;  %p561_p6 = scmp.lt.s32.totalorder %s21_s27, %s21_s27 }
   0xf   :  { %p557_p5 = scmp.ne.s32.totalorder %s21_s27, %s556_s10  ;;  %p562_p7 = scmp.lt.s32.totalorder %s556_s10, %s556_s10 }
  0x11   :  { %p563_p8 = por %p562_p7, %p561_p6 }
  0x13   :  { %p564_p9 = pnand %p563_p8, %p557_p5 }
  0x15   :  { %567 = shalt.err (!%p564_p9)
}
  0x16   :  { %26 = dma.hbm_to_vmem [thread:$0]  %s717_s0, 128, %s21_s27, [#allocation3], %s616_s29, %s616_s29, %s617_s30  }
  0x17   :  { %s618_s13 = smov [#allocation7]  }
  0x18   :  { %s48_s14 = sshll.u32 %s618_s13, 4  ;;  %s49_s14 = int_to_ptr.vmem [resolvable:$true] %s48_s14 }
  0x19   :  { %s576_s15 = scalar_lea.vmem %s49_s14, 1024  ;;  %p581_p11 = scmp.lt.s32.totalorder %s49_s14, %s49_s14 }
  0x1a   :  { %p577_p10 = scmp.ne.s32.totalorder %s49_s14, %s576_s15  ;;  %p582_p12 = scmp.lt.s32.totalorder %s576_s15, %s576_s15 }
  0x1c   :  { %p583_p13 = por %p582_p12, %p581_p11 }
  0x1e   :  { %p584_p0 = pnand %p583_p13, %p577_p10 }
  0x20   :  { %587 = shalt.err (!%p584_p0)
}
  0x21   :  { %54 = dma.hbm_to_vmem [thread:$0]  %s721_s4, 1024, %s49_s14, [#allocation6], %s616_s29, %s616_s29, %s617_s30  }
  0x22   :  { %608 = dma.done.wait [#allocation3], 128  }
  0x23   :  { %609 = vsyncadd [#allocation3], 4294967168 }
  0x24   :  { %610 = dma.done.wait [#allocation6], 2048  }
  0x25   :  { %611 = vsyncadd [#allocation6], 4294965248  ;;  %v619_v0 = vmov 0.0   ;;  %vm620_vm0 = vmmov 0   ;;  %v507_v1 = vld [vmem:[#allocation5 + $0x38] sm:$0xff]   ;;  %v508_v2 = vld [vmem:[#allocation5 + $0x30] sm:$0xff]   ;;  %v211_v44 = vlaneseq }
  0x26   :  { %459 = vmatprep.subr.bf16.mxu0 %v619_v0  ;;  %475 = vmatprep.mubr.msk.bf16.mxu0 %vm620_vm0, %v619_v0  ;;  %v509_v3 = vld [vmem:[#allocation5 + $0x28] sm:$0xff]   ;;  %v510_v4 = vld [vmem:[#allocation5 + $0x20] sm:$0xff]   ;;  %v511_v5 = vld [vmem:[#allocation5 + $0x18] sm:$0xff]   ;;  %s621_s21 = smov [#allocation8]  }
  0x27   :  { %479 = vmatprep.subr.bf16.mxu1 %v619_v0  ;;  %495 = vmatprep.mubr.msk.bf16.mxu1 %vm620_vm0, %v619_v0  ;;  %v512_v6 = vld [vmem:[#allocation5 + $0x10] sm:$0xff]   ;;  %v513_v7 = vld [vmem:[#allocation5 + $0x8] sm:$0xff]   ;;  %v514_v8 = vld [vmem:[#allocation5] sm:$0xff]   ;;  %v212_v45 = vshrl.u32 %v211_v44, 7  ;;  %s402_s22 = sshll.u32 %s621_s21, 4  ;;  %s403_s22 = int_to_ptr.vmem [resolvable:$true] %s402_s22 }
  0x28   :  { %460 = vmatpush3.bf16.msra.mxu0 %v507_v1  ;;  %v515_v9 = vld [vmem:[#allocation2] sm:$0xff]   ;;  %v517_v11 = vld [vmem:[#allocation7 + $0x30] sm:$0xff]   ;;  %v518_v12 = vld [vmem:[#allocation7 + $0x28] sm:$0xff]   ;;  %p593_p2 = scmp.lt.s32.totalorder %s403_s22, %s403_s22 }
  0x29   :  { %461 = vmatprep.subr.bf16.mxu0 %v619_v0  ;;  %v516_v10 = vld [vmem:[#allocation7 + $0x38] sm:$0xff]   ;;  %v519_v13 = vld [vmem:[#allocation7 + $0x20] sm:$0xff]   ;;  %v521_v15 = vld [vmem:[#allocation7 + $0x10] sm:$0xff]   ;;  %v213_v47 = vsub.s32 0, %v212_v45 }
  0x2a   :  { %480 = vmatpush3.bf16.msra.mxu1 %v516_v10  ;;  %v520_v14 = vld [vmem:[#allocation7 + $0x18] sm:$0xff]   ;;  %v522_v16 = vld [vmem:[#allocation7 + $0x8] sm:$0xff]   ;;  %v523_v17 = vld [vmem:[#allocation7] sm:$0xff]  }
  0x2b   :  { %481 = vmatprep.subr.bf16.mxu1 %v619_v0  ;;  %v203_v46 = vld [vmem:[%s719_s2] sm:$0x1] }
  0x2c   :  { %462 = vmatpush3.bf16.msra.mxu0 %v508_v2  ;;  %v207_v50 = vld [vmem:[%s720_s3] sm:$0x1] }
  0x2d   :  { %463 = vmatprep.subr.bf16.mxu0 %v619_v0 }
  0x2e   :  { %482 = vmatpush3.bf16.msra.mxu1 %v517_v11 }
  0x2f   :  { %483 = vmatprep.subr.bf16.mxu1 %v619_v0 }
  0x30   :  { %464 = vmatpush3.bf16.msra.mxu0 %v509_v3 }
  0x31   :  { %465 = vmatprep.subr.bf16.mxu0 %v619_v0 }
  0x32   :  { %484 = vmatpush3.bf16.msra.mxu1 %v518_v12 }
  0x33   :  { %485 = vmatprep.subr.bf16.mxu1 %v619_v0 }
  0x34   :  { %466 = vmatpush3.bf16.msra.mxu0 %v510_v4 }
  0x35   :  { %467 = vmatprep.subr.bf16.mxu0 %v619_v0 }
  0x36   :  { %486 = vmatpush3.bf16.msra.mxu1 %v519_v13 }
  0x37   :  { %487 = vmatprep.subr.bf16.mxu1 %v619_v0 }
  0x38   :  { %468 = vmatpush3.bf16.msra.mxu0 %v511_v5 }
  0x39   :  { %469 = vmatprep.subr.bf16.mxu0 %v619_v0 }
  0x3a   :  { %488 = vmatpush3.bf16.msra.mxu1 %v520_v14 }
  0x3b   :  { %489 = vmatprep.subr.bf16.mxu1 %v619_v0 }
  0x3c   :  { %470 = vmatpush3.bf16.msra.mxu0 %v512_v6 }
  0x3d   :  { %471 = vmatprep.subr.bf16.mxu0 %v619_v0 }
  0x3e   :  { %490 = vmatpush3.bf16.msra.mxu1 %v521_v15 }
  0x3f   :  { %491 = vmatprep.subr.bf16.mxu1 %v619_v0 }
  0x40   :  { %472 = vmatpush3.bf16.msra.mxu0 %v513_v7 }
  0x41   :  { %473 = vmatprep.subr.bf16.mxu0 %v619_v0 }
  0x42   :  { %492 = vmatpush3.bf16.msra.mxu1 %v522_v16 }
  0x43   :  { %493 = vmatprep.subr.bf16.mxu1 %v619_v0 }
  0x44   :  { %474 = vmatpush3.bf16.msra.mxu0 %v514_v8 }
  0x46   :  { %494 = vmatpush3.bf16.msra.mxu1 %v523_v17 }
  0x47   :  { %476 = vmatmul.mubr.bf16.vlgmr.msra.gmra.mxu0 %v515_v9 }
 0x107   :  { %v175_v18 = vpop.f32.mrf.mxu0 }
 0x108   :  { %v190_v21 = vmul.f32 %v175_v18, %v175_v18 }
 0x109   :  { %v477_v19 = vpop.f32.mrf.mxu0 }
 0x10b   :  { %v178_v20 = vpop.f32.mrf.mxu0 }
 0x10c   :  { %v182_v22 = vadd.f32 %v178_v20, %v175_v18  ;;  %v191_v23 = vmul.f32 %v178_v20, %v178_v20 }
 0x10d   :  { %v478_v24 = vpop.f32.mrf.mxu0 }
 0x10e   :  { %v183_v25 = vrot.slane %v182_v22, 4  ;;  %v192_v26 = vadd.f32 %v191_v23, %v190_v21  ;;  %v362_v21 = vld [vmem:[%s722_s5] sm:$0x1]  ;;  %s588_s5 = scalar_lea.vmem %s403_s22, 128 }
 0x10f   :  { %v366_v24 = vld [vmem:[%s723_s6] sm:$0x1]  ;;  %p589_p1 = scmp.ne.s32.totalorder %s403_s22, %s588_s5  ;;  %p594_p3 = scmp.lt.s32.totalorder %s588_s5, %s588_s5 }
 0x110   :  { %v184_v27 = vadd.f32 %v183_v25, %v182_v22  ;;  %v193_v28 = vrot.slane %v192_v26, 4 }
 0x111   :  { %p595_p4 = por %p594_p3, %p593_p2 }
 0x112   :  { %v185_v29 = vrot.slane %v184_v27, 2  ;;  %v194_v30 = vadd.f32 %v193_v28, %v192_v26 }
 0x113   :  { %p596_p5 = pnand %p595_p4, %p589_p1 }
 0x114   :  { %v186_v31 = vadd.f32 %v185_v29, %v184_v27  ;;  %v195_v32 = vrot.slane %v194_v30, 2 }
 0x116   :  { %v187_v33 = vrot.slane %v186_v31, 1  ;;  %v196_v34 = vadd.f32 %v195_v32, %v194_v30 }
 0x118   :  { %v188_v35 = vadd.f32 %v187_v33, %v186_v31  ;;  %v197_v36 = vrot.slane %v196_v34, 1 }
 0x11a   :  { %v189_v37 = vmul.f32 0.125, %v188_v35  ;;  %v198_v38 = vadd.f32 %v197_v36, %v196_v34 }
 0x11c   :  { %v199_v39 = vmul.f32 0.125, %v198_v38  ;;  %v200_v40 = vmul.f32 %v189_v37, %v189_v37 }
 0x11e   :  { %v201_v41 = vsub.f32 %v199_v39, %v200_v40 }
 0x120   :  { %v202_v42 = vmax.f32 %v201_v41, 0.0 }
 0x122   :  { %v204_v43 = vadd.f32 1e-05, %v202_v42 }
 0x124   :  { %524 = vrsqrt.f32 %v204_v43 }
 0x131   :  { %v525_v48 = vpop.eup %524 }
 0x132   :  { %v206_v49 = vmul.f32 %v525_v48, %v203_v46 }
 0x134   :  { %v208_v51 = vmul.f32 %v206_v49, %v189_v37  ;;  %v214_v52 = vrot.slane %v206_v49, %v213_v47 }
 0x136   :  { %v209_v53 = vsub.f32 %v207_v50, %v208_v51  ;;  %v216_v54 = vmul.f32 %v214_v52, %v175_v18 }
 0x138   :  { %v222_v55 = vrot.slane %v209_v53, %v213_v47 }
 0x13a   :  { %v224_v56 = vadd.f32 %v222_v55, %v216_v54 }
 0x13c   :  { %v226_v57 = vmax.f32 %v224_v56, 0.0 }
 0x13e   :  { %v235_v58 = vpack.c.bf16 %v619_v0, %v226_v57 }
 0x140   :  { %496 = vmatmul.mubr.bf16.vlgmr.msra.gmra.mxu1 %v235_v58 }
 0x200   :  { %v334_v59 = vpop.f32.mrf.mxu1 }
 0x201   :  { %v349_v62 = vmul.f32 %v334_v59, %v334_v59 }
 0x202   :  { %v497_v60 = vpop.f32.mrf.mxu1 }
 0x204   :  { %v337_v61 = vpop.f32.mrf.mxu1 }
 0x205   :  { %v341_v63 = vadd.f32 %v337_v61, %v334_v59  ;;  %v350_v1 = vmul.f32 %v337_v61, %v337_v61 }
 0x206   :  { %v498_v2 = vpop.f32.mrf.mxu1 }
 0x207   :  { %v342_v3 = vrot.slane %v341_v63, 4  ;;  %v351_v4 = vadd.f32 %v350_v1, %v349_v62 }
 0x209   :  { %v343_v5 = vadd.f32 %v342_v3, %v341_v63  ;;  %v352_v6 = vrot.slane %v351_v4, 4 }
 0x20b   :  { %v344_v7 = vrot.slane %v343_v5, 2  ;;  %v353_v8 = vadd.f32 %v352_v6, %v351_v4 }
 0x20d   :  { %v345_v9 = vadd.f32 %v344_v7, %v343_v5  ;;  %v354_v10 = vrot.slane %v353_v8, 2 }
 0x20f   :  { %v346_v11 = vrot.slane %v345_v9, 1  ;;  %v355_v12 = vadd.f32 %v354_v10, %v353_v8 }
 0x211   :  { %v347_v13 = vadd.f32 %v346_v11, %v345_v9  ;;  %v356_v0 = vrot.slane %v355_v12, 1 }
 0x213   :  { %v348_v14 = vmul.f32 0.125, %v347_v13  ;;  %v357_v15 = vadd.f32 %v356_v0, %v355_v12 }
 0x215   :  { %v358_v16 = vmul.f32 0.125, %v357_v15  ;;  %v359_v17 = vmul.f32 %v348_v14, %v348_v14 }
 0x217   :  { %v360_v18 = vsub.f32 %v358_v16, %v359_v17 }
 0x219   :  { %v361_v19 = vmax.f32 %v360_v18, 0.0 }
 0x21b   :  { %v363_v20 = vadd.f32 1e-05, %v361_v19 }
 0x21d   :  { %526 = vrsqrt.f32 %v363_v20 }
 0x22a   :  { %v527_v22 = vpop.eup %526 }
 0x22b   :  { %v365_v23 = vmul.f32 %v527_v22, %v362_v21 }
 0x22d   :  { %v367_v25 = vmul.f32 %v365_v23, %v348_v14  ;;  %v373_v26 = vrot.slane %v365_v23, %v213_v47 }
 0x22f   :  { %v368_v27 = vsub.f32 %v366_v24, %v367_v25  ;;  %v375_v28 = vmul.f32 %v373_v26, %v334_v59  ;;  %v376_v29 = vmul.f32 %v373_v26, %v337_v61 }
 0x231   :  { %v381_v30 = vrot.slane %v368_v27, %v213_v47 }
 0x233   :  { %v384_v31 = vadd.f32 %v381_v30, %v376_v29  ;;  %v383_v32 = vadd.f32 %v381_v30, %v375_v28 }
 0x235   :  { %v385_v33 = vmax.f32 %v383_v32, 0.0  ;;  %v386_v34 = vmax.f32 %v384_v31, 0.0 }
 0x237   :  { %v439_v35 = vpack.c.bf16 %v386_v34, %v385_v33 }
 0x239   :  { %440 = vst [vmem:[#allocation8] sm:$0xff] %v439_v35  }
 0x23a   :  { %599 = shalt.err (!%p596_p5)
}
 0x23b   :  { %408 = dma.vmem_to_hbm [thread:$0]  %s403_s22, 128, %s724_s7, [#allocation4], %s616_s29, %s616_s29, %s617_s30  }
 0x23c   :  { %612 = dma.done.wait [#allocation4], 128  }
 0x23d   :  { %613 = vsyncadd [#allocation4], 4294967168 }
 0x23e   :  { %412 = vsyncpa [#allocation3], 1 }
 0x23f   :  { %413 = vsyncpa [#allocation6], 1 }
 0x240   :  { %414 = vsyncpa [#allocation4], 1 }

</bundles_post_ra>
